<compile_context>
chip_gen: v6e
topology: v6e:2x2x1
jax: 0.10.0
libtpu: 0.0.40
codegen_flags: <defaults>
</compile_context>

<pallas_src>
import jax
import jax.numpy as jnp
from jax.experimental import pallas as pl
from jax.experimental.pallas import tpu as pltpu


def _round_up(x: int, m: int) -> int:
    return ((x + m - 1) // m) * m


def _linear_kernel(x_ref, w_ref, b_ref, o_ref):
    # x_ref: (TB, Cin)    activation tile, streams with the grid
    # w_ref: (Cin, Cout)  pre-transposed weight, resident across all steps
    # b_ref: (1, Cout)    bias (f32), resident
    # o_ref: (TB, Cout)   logical (un-padded) output tile
    acc = jnp.dot(x_ref[...], w_ref[...], preferred_element_type=jnp.float32)
    o_ref[...] = (acc + b_ref[...]).astype(o_ref.dtype)


def trainable_layer_forward(x, weight, bias, *, block_b: int = 8192,
                            use_bf16: bool = False):
    """Equivalent of trainable_layer(nn.Linear(Cin, Cout)).forward(x).

    x:      (B, Cin)      float32
    weight: (Cout, Cin)   PyTorch convention
    bias:   (Cout,)
    returns (B, Cout)
    """
    B, Cin = x.shape
    Cout = weight.shape[0]

    # One-time layout fix: (Cout, Cin) -> (Cin, Cout) so the kernel contracts
    # ((1,),(0,)) in native MXU feed layout.  (In a real model: done at init.)
    w_t = weight.T
    b2d = bias.reshape(1, Cout).astype(jnp.float32)

    out_dtype = x.dtype
    if use_bf16:
        x = x.astype(jnp.bfloat16)
        w_t = w_t.astype(jnp.bfloat16)
        out_dtype = jnp.bfloat16

    # Batch tile: big enough that each grid step's DMA amortizes the ~0.35us
    # per-step overhead, small enough that the grid keeps several steps for
    # 2-TensorCore sharding on v7x.
    TB = min(block_b, max(512, _round_up(pl.cdiv(B, 8), 8)))
    if TB >= B:
        TB = B  # single-step grid; full-dim block is always layout-legal
    grid = (pl.cdiv(B, TB),)

    # Scoped-VMEM budget from the actual double-buffered tile footprint
    # (keeps large TB usable on v5e's smaller default scope, and comfortably
    # under v7x's 64 MiB physical VMEM).
    x_item = jnp.dtype(x.dtype).itemsize
    o_item = jnp.dtype(out_dtype).itemsize
    step_bytes = TB * Cin * x_item + TB * Cout * o_item
    param_bytes = Cin * Cout * jnp.dtype(w_t.dtype).itemsize + Cout * 4
    vmem_limit = int(min(max(2 * (2 * step_bytes + param_bytes), 16 * 2**20),
                         48 * 2**20))

    out = pl.pallas_call(
        _linear_kernel,
        out_shape=jax.ShapeDtypeStruct((B, Cout), out_dtype),
        grid=grid,
        in_specs=[
            pl.BlockSpec((TB, Cin), lambda i: (i, 0)),    # streams over batch
            pl.BlockSpec((Cin, Cout), lambda i: (0, 0)),  # resident weight
            pl.BlockSpec((1, Cout), lambda i: (0, 0)),    # resident bias
        ],
        out_specs=pl.BlockSpec((TB, Cout), lambda i: (i, 0)),
        compiler_params=pltpu.CompilerParams(
            dimension_semantics=("parallel",),            # 2 TCs on v7x
            vmem_limit_bytes=vmem_limit,
        ),
    )(x, w_t, b2d)

    return out


if __name__ == "__main__":
    key = jax.random.PRNGKey(0)
    k_x, k_w, k_b, k_x2 = jax.random.split(key, 4)

    B, Cin, Cout = 8, 32, 64
    x = jax.random.normal(k_x, (B, Cin), dtype=jnp.float32)
    # Deterministic parameter init (roughly matches nn.Linear's uniform scale).
    bound = 1.0 / (Cin ** 0.5)
    weight = jax.random.uniform(k_w, (Cout, Cin), jnp.float32, -bound, bound)
    bias = jax.random.uniform(k_b, (Cout,), jnp.float32, -bound, bound)

    out = trainable_layer_forward(x, weight, bias)
    jax.block_until_ready(out)
    ref = x @ weight.T + bias
    assert out.shape == (B, Cout)
    assert jnp.allclose(out, ref, atol=1e-5, rtol=1e-5)

    # Larger batch: exercises the multi-step, megacore-parallel grid.
    B2 = 1024
    x2 = jax.random.normal(k_x2, (B2, Cin), dtype=jnp.float32)
    out2 = trainable_layer_forward(x2, weight, bias)
    jax.block_until_ready(out2)
    ref2 = x2 @ weight.T + bias
    assert out2.shape == (B2, Cout)
    assert jnp.allclose(out2, ref2, atol=1e-5, rtol=1e-5)

    # bf16 traffic-halving path (looser tolerance, f32 accumulation retained).
    out3 = trainable_layer_forward(x2, weight, bias, use_bf16=True)
    jax.block_until_ready(out3)
    assert out3.shape == (B2, Cout)
    assert jnp.allclose(out3.astype(jnp.float32), ref2, atol=5e-2, rtol=5e-2)

    print("KERNEL_OK")
</pallas_src>

<mosaic_0001>
module attributes {stable_mosaic.version = 11 : i64} {
  func.func @_linear_kernel(%arg0: i32, %arg1: memref<8x32xf32, #tpu.memory_space<vmem>>, %arg2: memref<32x64xf32, #tpu.memory_space<vmem>>, %arg3: memref<1x64xf32, #tpu.memory_space<vmem>>, %arg4: memref<8x64xf32, #tpu.memory_space<vmem>>) attributes {dimension_semantics = [#tpu.dimension_semantics<parallel>], iteration_bounds = array<i64: 1>, scalar_prefetch = 0 : i64, scratch_operands = 0 : i64, tpu.core_type = #tpu.core_type<tc>, window_params = [{transform_indices = @transform_0, window_bounds = array<i64: 8, 32>}, {pipeline_mode = #tpu.pipeline_mode<synchronous>, transform_indices = @transform_1, window_bounds = array<i64: 32, 64>}, {pipeline_mode = #tpu.pipeline_mode<synchronous>, transform_indices = @transform_2, window_bounds = array<i64: 1, 64>}, {transform_indices = @transform_3, window_bounds = array<i64: 8, 64>}]} {
    %c0 = arith.constant 0 : index
    %c0_0 = arith.constant 0 : index
    %0 = vector.load %arg1[%c0, %c0_0] : memref<8x32xf32, #tpu.memory_space<vmem>>, vector<8x32xf32>
    %c0_1 = arith.constant 0 : index
    %c0_2 = arith.constant 0 : index
    %1 = vector.load %arg2[%c0_1, %c0_2] : memref<32x64xf32, #tpu.memory_space<vmem>>, vector<32x64xf32>
    %cst = arith.constant dense<0.000000e+00> : vector<8x64xf32>
    %2 = tpu.matmul %0, %1, %cst {dimension_numbers = #tpu.dot_dimension_numbers<[1], [0], [0], [1], [0, 0, 1, 1], [], []>} : vector<8x32xf32>, vector<32x64xf32>, vector<8x64xf32> -> vector<8x64xf32>
    %c0_3 = arith.constant 0 : index
    %c0_4 = arith.constant 0 : index
    %3 = vector.load %arg3[%c0_3, %c0_4] : memref<1x64xf32, #tpu.memory_space<vmem>>, vector<1x64xf32>
    %4 = vector.broadcast %3 : vector<1x64xf32> to vector<8x64xf32>
    %5 = arith.addf %2, %4 : vector<8x64xf32>
    %c0_5 = arith.constant 0 : index
    %c0_6 = arith.constant 0 : index
    %6 = vector.load %arg4[%c0_5, %c0_6] : memref<8x64xf32, #tpu.memory_space<vmem>>, vector<8x64xf32>
    tpu.vector_store %arg4[%c0_5, %c0_6], %5 {strides = array<i32>} : memref<8x64xf32, #tpu.memory_space<vmem>>, vector<8x64xf32>,
    return
  }
  func.func @transform_0(%arg0: i32) -> (i32, i32) {
    %c0_i32 = arith.constant 0 : i32
    %c0_i32_0 = arith.constant 0 : i32
    return %arg0, %c0_i32 : i32, i32
  }
  func.func @transform_1(%arg0: i32) -> (i32, i32) {
    %c0_i32 = arith.constant 0 : i32
    %c0_i32_0 = arith.constant 0 : i32
    %c0_i32_1 = arith.constant 0 : i32
    return %c0_i32, %c0_i32_0 : i32, i32
  }
  func.func @transform_2(%arg0: i32) -> (i32, i32) {
    %c0_i32 = arith.constant 0 : i32
    %c0_i32_0 = arith.constant 0 : i32
    %c0_i32_1 = arith.constant 0 : i32
    return %c0_i32, %c0_i32_0 : i32, i32
  }
  func.func @transform_3(%arg0: i32) -> (i32, i32) {
    %c0_i32 = arith.constant 0 : i32
    %c0_i32_0 = arith.constant 0 : i32
    return %arg0, %c0_i32 : i32, i32
  }
}

</mosaic_0001>

<bundles_post_ra>
// kernel: tpu_custom_call.1
= control target key start
LH: loop header
LB: loop body
LE: loop exit
PB: predicated region body
PF: predicated region fallthrough
CT: control target
= control target key end

     0   :  { %8 = vsyncpa [#allocation3], 0  ;;  %s275_s0 = inlined_call_operand.hbm [shape: f32[8,32], index: 0, kind: input, shape index: {}]   ;;  %s276_s1 = inlined_call_operand.hbm [shape: f32[32,64], index: 1, kind: input, shape index: {}]   ;;  %s277_s2 = inlined_call_operand.vmem [shape: f32[1,64], index: 2, kind: input, shape index: {}]   ;;  %s278_s3 = inlined_call_operand.hbm [shape: f32[8,64], index: 3, kind: output, shape index: {}]  }
   0x1   :  { %9 = vsyncpa [#allocation6], 0 }
   0x2   :  { %10 = vsyncpa [#allocation4], 0  ;;  %s236_s12 = smov [#allocation2]   ;;  %s237_s14 = smov [#allocation5]  }
   0x3   :  { %s17_s13 = sshll.u32 %s236_s12, 4  ;;  %s26_s15 = sshll.u32 %s237_s14, 4  ;;  %s18_s13 = int_to_ptr.vmem [resolvable:$true] %s17_s13  ;;  %s27_s15 = int_to_ptr.vmem [resolvable:$true] %s26_s15 }
   0x4   :  { %s178_s16 = scalar_lea.vmem %s18_s13, 128  ;;  %p183_p1 = scmp.lt.s32.totalorder %s18_s13, %s18_s13 }
   0x5   :  { %p179_p0 = scmp.ne.s32.totalorder %s18_s13, %s178_s16  ;;  %p184_p2 = scmp.lt.s32.totalorder %s178_s16, %s178_s16 }
   0x7   :  { %p185_p3 = por %p184_p2, %p183_p1 }
   0x9   :  { %p186_p4 = pnand %p185_p3, %p179_p0 }
   0xb   :  { %189 = shalt.err (!%p186_p4)
}
   0xc   :  { %20 = dma.hbm_to_vmem [thread:$0]  %s275_s0, 128, %s18_s13, [#allocation3]  }
   0xd   :  { %s198_s19 = scalar_lea.vmem %s27_s15, 512  ;;  %p203_p6 = scmp.lt.s32.totalorder %s27_s15, %s27_s15 }
   0xe   :  { %p199_p5 = scmp.ne.s32.totalorder %s27_s15, %s198_s19  ;;  %p204_p7 = scmp.lt.s32.totalorder %s198_s19, %s198_s19 }
  0x10   :  { %p205_p8 = por %p204_p7, %p203_p6 }
  0x12   :  { %p206_p9 = pnand %p205_p8, %p199_p5 }
  0x14   :  { %209 = shalt.err (!%p206_p9)
}
  0x15   :  { %s238_s20 = smov 128   ;;  %s239_s21 = smov 8  }
  0x16   :  { %32 = dma.hbm_to_vmem [thread:$0]  %s276_s1, 512, %s27_s15, [#allocation6], %s238_s20, %s238_s20, %s239_s21  }
  0x17   :  { %230 = dma.done.wait [#allocation3], 128  }
  0x18   :  { %231 = vsyncadd [#allocation3], 4294967168 }
  0x19   :  { %232 = dma.done.wait [#allocation6], 512  }
  0x1a   :  { %233 = vsyncadd [#allocation6], 4294966784  ;;  %v240_v0 = vmov 0.0   ;;  %vm241_vm0 = vmmov 0   ;;  %v45_v1 = vld [vmem:[#allocation5 + $0x18] sm:$0xff]  ;;  %v44_v2 = vld [vmem:[#allocation5 + $0x10] sm:$0xff] }
  0x1b   :  { %152 = vmatprep.subr.mxu0 %v240_v0  ;;  %160 = vmatprep.mubr.msk.f32.mxu0 %vm241_vm0, %v240_v0  ;;  %v43_v3 = vld [vmem:[#allocation5 + $0x8] sm:$0xff]  ;;  %v42_v4 = vld [vmem:[#allocation5] sm:$0xff]  ;;  %v41_v5 = vld [vmem:[#allocation2] sm:$0xff]  ;;  %vm53_vm1 = vcmask 261120   ;;  %s242_s24 = smov [#allocation7]   ;;  %vm127_vm2 = vcmask 523264  }
  0x1c   :  { %153 = vmatpush3.msra.mxu0 %v45_v1  ;;  %v145_v6 = vld [vmem:[%s277_s2] ss:$0 sm:$0xff]  ;;  %s135_s25 = sshll.u32 %s242_s24, 4  ;;  %s136_s25 = int_to_ptr.vmem [resolvable:$true] %s135_s25 }
  0x1d   :  { %154 = vmatprep.subr.mxu0 %v240_v0  ;;  %s210_s26 = scalar_lea.vmem %s136_s25, 128  ;;  %p215_p11 = scmp.lt.s32.totalorder %s136_s25, %s136_s25 }
  0x1e   :  { %155 = vmatpush3.msra.mxu0 %v44_v2  ;;  %p211_p10 = scmp.ne.s32.totalorder %s136_s25, %s210_s26  ;;  %p216_p12 = scmp.lt.s32.totalorder %s210_s26, %s210_s26 }
  0x1f   :  { %156 = vmatprep.subr.mxu0 %v240_v0 }
  0x20   :  { %157 = vmatpush3.msra.mxu0 %v43_v3  ;;  %p217_p13 = por %p216_p12, %p215_p11 }
  0x21   :  { %158 = vmatprep.subr.mxu0 %v240_v0 }
  0x22   :  { %159 = vmatpush3.msra.mxu0 %v42_v4  ;;  %p218_p0 = pnand %p217_p13, %p211_p10 }
  0x23   :  { %161 = vmatmul.mubr.msk.f32.vlgmr.msra.gmra.mxu0 %vm53_vm1, %v41_v5 }
  0xe3   :  { %v123_v7 = vpop.f32.mrf.mxu0 }
  0xe4   :  { %v124_v8 = vadd.f32 %v145_v6, %v123_v7 }
  0xe5   :  { %v162_v9 = vpop.f32.mrf.mxu0 }
  0xe6   :  { %128 = vst.msk [vmem:[#allocation7] sm:$0xff] %vm127_vm2, %v124_v8 }
  0xe7   :  { %221 = shalt.err (!%p218_p0)
}
  0xe8   :  { %138 = dma.vmem_to_hbm [thread:$0]  %s136_s25, 128, %s278_s3, [#allocation4]  }
  0xe9   :  { %234 = dma.done.wait [#allocation4], 128  }
  0xea   :  { %235 = vsyncadd [#allocation4], 4294967168 }
  0xeb   :  { %142 = vsyncpa [#allocation3], 1 }
  0xec   :  { %143 = vsyncpa [#allocation6], 1 }
  0xed   :  { %144 = vsyncpa [#allocation4], 1 }

</bundles_post_ra>
